<compile_context>
chip_gen: v7x
topology: tpu7x:2x2x1
jax: 0.10.0
libtpu: 0.0.40
codegen_flags: <defaults>
</compile_context>

<pallas_src>
import functools

import jax
import jax.numpy as jnp
from jax.experimental import pallas as pl
from jax.experimental.pallas import tpu as pltpu


# ----------------------------------------------------------------------------
# Kernel (all-f32: one materialization per hidden activation, no casts)
# ----------------------------------------------------------------------------
def generator_kernel(x_ref, w1_ref, b1_ref, w2_ref, b2_ref, w3_ref, b3_ref, out_ref):
    # fc1 + ReLU
    h = jnp.dot(x_ref[...], w1_ref[...], preferred_element_type=jnp.float32)
    h = jnp.maximum(h + b1_ref[...], 0.0)
    # fc2 + ReLU
    h = jnp.dot(h, w2_ref[...], preferred_element_type=jnp.float32)
    h = jnp.maximum(h + b2_ref[...], 0.0)
    # fout (no activation)
    y = jnp.dot(h, w3_ref[...], preferred_element_type=jnp.float32)
    out_ref[...] = (y + b3_ref[...]).astype(out_ref.dtype)


# ----------------------------------------------------------------------------
# Param prep (one-time): PyTorch layout -> kernel layout
# ----------------------------------------------------------------------------
def _round_up(n, m):
    return ((n + m - 1) // m) * m


def _pad_to(a, shape):
    return jnp.pad(a, [(0, s - d) for d, s in zip(a.shape, shape)])


def prep_generator_params(params, lane=128):
    """Transpose (out,in)->(in,out) and zero-pad hidden to a multiple of 128.
    Zero-padding is exact: padded hidden lanes stay 0 through bias=0 + ReLU
    and contribute 0 to the next matmul.  Everything stays f32."""
    L = params["fc1_w"].shape[1]
    H = params["fc1_w"].shape[0]
    O = params["fout_w"].shape[0]
    Hp = _round_up(H, lane)

    w1 = _pad_to(params["fc1_w"].T, (L, Hp)).astype(jnp.float32)
    w2 = _pad_to(params["fc2_w"].T, (Hp, Hp)).astype(jnp.float32)
    w3 = _pad_to(params["fout_w"].T, (Hp, O)).astype(jnp.float32)
    b1 = _pad_to(params["fc1_b"][None, :], (1, Hp)).astype(jnp.float32)
    b2 = _pad_to(params["fc2_b"][None, :], (1, Hp)).astype(jnp.float32)
    b3 = params["fout_b"][None, :].astype(jnp.float32)
    return dict(w1=w1, b1=b1, w2=w2, b2=b2, w3=w3, b3=b3)


# ----------------------------------------------------------------------------
# Forward (jit'd; batch-tiled pallas_call)
# ----------------------------------------------------------------------------
_MAX_TB = 8192          # keeps f32 intermediates well under v7x's 64 MiB VMEM
_DEFAULT_TB = 4096      # amortizes per-grid-step overhead for production batches


@functools.partial(jax.jit, static_argnames=("block_batch",))
def generator_forward(x, prepped, *, block_batch=_DEFAULT_TB):
    """x: (B, sz_latent) f32 (bf16 also accepted). prepped: prep_generator_params()."""
    B, L = x.shape
    Hp = prepped["w2"].shape[0]
    out_dim = prepped["w3"].shape[1]

    # --- batch tile ---------------------------------------------------------
    # * multiple of 8 sublanes
    # * <= _MAX_TB (v7x 64 MiB VMEM budget)
    # * <= ceil(B/2) when possible -> at least 2 grid steps so v7x's two
    #   TensorCores both get work under the "parallel" semantics.
    B_pad8 = _round_up(B, 8)
    half = _round_up(pl.cdiv(B_pad8, 2), 8)
    TB = max(8, min(block_batch, _MAX_TB, half))
    TB = _round_up(TB, 8)
    B_pad = _round_up(B, TB)
    x_p = x if B_pad == B else jnp.pad(x, ((0, B_pad - B), (0, 0)))
    nb = B_pad // TB

    # --- VMEM budget, scaled with the tile (cap 48 MiB: safe on v5e/v6e/v7x) -
    bytes_per = jnp.dtype(jnp.float32).itemsize
    weights_bytes = sum(int(v.size) * bytes_per for v in prepped.values())
    stream_bytes = 2 * TB * (L + out_dim) * bytes_per          # double-buffered x / out
    interm_bytes = 6 * TB * Hp * bytes_per                     # h1/h2 + matmul temporaries
    vmem_limit = int(min(48 * 2**20,
                         max(32 * 2**20,
                             weights_bytes + stream_bytes + interm_bytes + (4 << 20))))

    # Constant index_map -> block index never changes, so the pipeline fetches
    # these once and keeps them VMEM-resident (no per-step re-DMA).
    resident = lambda shape: pl.BlockSpec(shape, lambda i: (0, 0))

    out = pl.pallas_call(
        generator_kernel,
        grid=(nb,),
        in_specs=[
            pl.BlockSpec((TB, L), lambda i: (i, 0)),       # x tile (streamed)
            resident((L, Hp)),                             # w1
            resident((1, Hp)),                             # b1
            resident((Hp, Hp)),                            # w2
            resident((1, Hp)),                             # b2
            resident((Hp, out_dim)),                       # w3
            resident((1, out_dim)),                        # b3
        ],
        out_specs=pl.BlockSpec((TB, out_dim), lambda i: (i, 0)),
        out_shape=jax.ShapeDtypeStruct((B_pad, out_dim), jnp.float32),
        compiler_params=pltpu.CompilerParams(
            dimension_semantics=("parallel",),
            vmem_limit_bytes=vmem_limit,
        ),
    )(x_p, prepped["w1"], prepped["b1"], prepped["w2"], prepped["b2"],
      prepped["w3"], prepped["b3"])

    return out[:B] if B_pad != B else out


# ----------------------------------------------------------------------------
# Init + reference
# ----------------------------------------------------------------------------
def init_generator_params(key, sz_latent, sz_hidden, sz_out):
    """Deterministic PyTorch-style init: U(-1/sqrt(fan_in), 1/sqrt(fan_in))."""
    ks = jax.random.split(key, 6)

    def lin(kw, kb, fan_in, fan_out):
        bound = 1.0 / jnp.sqrt(fan_in)
        w = jax.random.uniform(kw, (fan_out, fan_in), jnp.float32, -bound, bound)
        b = jax.random.uniform(kb, (fan_out,), jnp.float32, -bound, bound)
        return w, b

    fc1_w, fc1_b = lin(ks[0], ks[1], sz_latent, sz_hidden)
    fc2_w, fc2_b = lin(ks[2], ks[3], sz_hidden, sz_hidden)
    fout_w, fout_b = lin(ks[4], ks[5], sz_hidden, sz_out)
    return dict(fc1_w=fc1_w, fc1_b=fc1_b,
                fc2_w=fc2_w, fc2_b=fc2_b,
                fout_w=fout_w, fout_b=fout_b)


def generator_ref(x, params):
    """Pure-JAX reference with PyTorch f32 semantics."""
    h = jnp.maximum(x @ params["fc1_w"].T + params["fc1_b"], 0.0)
    h = jnp.maximum(h @ params["fc2_w"].T + params["fc2_b"], 0.0)
    return h @ params["fout_w"].T + params["fout_b"]


# ----------------------------------------------------------------------------
if __name__ == "__main__":
    sz_latent, sz_hidden, sz_out = 8, 32, 2
    batch = 64

    key = jax.random.PRNGKey(0)
    k_params, k_x = jax.random.split(key)
    params = init_generator_params(k_params, sz_latent, sz_hidden, sz_out)
    x = jax.random.normal(k_x, (batch, sz_latent), jnp.float32)

    prepped = prep_generator_params(params)
    ref = generator_ref(x, params)

    # Default tile (toy batch still gets >= 2 grid steps via the half-B cap).
    out = jax.block_until_ready(generator_forward(x, prepped))
    assert out.shape == (batch, sz_out), out.shape
    # Tolerance covers possible reduced-precision MXU passes for f32 inputs.
    assert jnp.allclose(out, ref, atol=5e-2, rtol=5e-2), "mismatch vs f32 reference"

    # Small explicit tile so the toy batch exercises a multi-step grid (64/16 = 4).
    out_tiled = jax.block_until_ready(generator_forward(x, prepped, block_batch=16))
    assert jnp.allclose(out_tiled, ref, atol=5e-2, rtol=5e-2), "mismatch (tiled)"

    # Ragged-batch path (B not a multiple of the tile / sublane count).
    out_small = jax.block_until_ready(generator_forward(x[:10], prepped))
    assert out_small.shape == (10, sz_out)
    assert jnp.allclose(out_small, ref[:10], atol=5e-2, rtol=5e-2), "mismatch (ragged)"

    print("KERNEL_OK")
</pallas_src>

<mosaic_0001>
module attributes {stable_mosaic.version = 11 : i64} {
  func.func @generator_kernel(%arg0: i32, %arg1: memref<32x8xf32, #tpu.memory_space<vmem>>, %arg2: memref<8x128xf32, #tpu.memory_space<vmem>>, %arg3: memref<1x128xf32, #tpu.memory_space<vmem>>, %arg4: memref<128x128xf32, #tpu.memory_space<vmem>>, %arg5: memref<1x128xf32, #tpu.memory_space<vmem>>, %arg6: memref<128x2xf32, #tpu.memory_space<vmem>>, %arg7: memref<1x2xf32, #tpu.memory_space<vmem>>, %arg8: memref<32x2xf32, #tpu.memory_space<vmem>>) attributes {dimension_semantics = [#tpu.dimension_semantics<parallel>], iteration_bounds = array<i64: 2>, scalar_prefetch = 0 : i64, scratch_operands = 0 : i64, tpu.core_type = #tpu.core_type<tc>, window_params = [{transform_indices = @transform_0, window_bounds = array<i64: 32, 8>}, {pipeline_mode = #tpu.pipeline_mode<synchronous>, transform_indices = @transform_1, window_bounds = array<i64: 8, 128>}, {pipeline_mode = #tpu.pipeline_mode<synchronous>, transform_indices = @transform_2, window_bounds = array<i64: 1, 128>}, {pipeline_mode = #tpu.pipeline_mode<synchronous>, transform_indices = @transform_3, window_bounds = array<i64: 128, 128>}, {pipeline_mode = #tpu.pipeline_mode<synchronous>, transform_indices = @transform_4, window_bounds = array<i64: 1, 128>}, {pipeline_mode = #tpu.pipeline_mode<synchronous>, transform_indices = @transform_5, window_bounds = array<i64: 128, 2>}, {pipeline_mode = #tpu.pipeline_mode<synchronous>, transform_indices = @transform_6, window_bounds = array<i64: 1, 2>}, {transform_indices = @transform_7, window_bounds = array<i64: 32, 2>}]} {
    %c0 = arith.constant 0 : index
    %c0_0 = arith.constant 0 : index
    %0 = vector.load %arg1[%c0, %c0_0] : memref<32x8xf32, #tpu.memory_space<vmem>>, vector<32x8xf32>
    %c0_1 = arith.constant 0 : index
    %c0_2 = arith.constant 0 : index
    %1 = vector.load %arg2[%c0_1, %c0_2] : memref<8x128xf32, #tpu.memory_space<vmem>>, vector<8x128xf32>
    %cst = arith.constant dense<0.000000e+00> : vector<32x128xf32>
    %2 = tpu.matmul %0, %1, %cst {dimension_numbers = #tpu.dot_dimension_numbers<[1], [0], [0], [1], [0, 0, 1, 1], [], []>} : vector<32x8xf32>, vector<8x128xf32>, vector<32x128xf32> -> vector<32x128xf32>
    %c0_3 = arith.constant 0 : index
    %c0_4 = arith.constant 0 : index
    %3 = vector.load %arg3[%c0_3, %c0_4] : memref<1x128xf32, #tpu.memory_space<vmem>>, vector<1x128xf32>
    %4 = vector.broadcast %3 : vector<1x128xf32> to vector<32x128xf32>
    %5 = arith.addf %2, %4 : vector<32x128xf32>
    %cst_5 = arith.constant 0.000000e+00 : f32
    %6 = vector.broadcast %cst_5 : f32 to vector<32x128xf32>
    %7 = arith.maximumf %5, %6 : vector<32x128xf32>
    %c0_6 = arith.constant 0 : index
    %c0_7 = arith.constant 0 : index
    %8 = vector.load %arg4[%c0_6, %c0_7] : memref<128x128xf32, #tpu.memory_space<vmem>>, vector<128x128xf32>
    %cst_8 = arith.constant dense<0.000000e+00> : vector<32x128xf32>
    %9 = tpu.matmul %7, %8, %cst_8 {dimension_numbers = #tpu.dot_dimension_numbers<[1], [0], [0], [1], [0, 0, 1, 1], [], []>} : vector<32x128xf32>, vector<128x128xf32>, vector<32x128xf32> -> vector<32x128xf32>
    %c0_9 = arith.constant 0 : index
    %c0_10 = arith.constant 0 : index
    %10 = vector.load %arg5[%c0_9, %c0_10] : memref<1x128xf32, #tpu.memory_space<vmem>>, vector<1x128xf32>
    %11 = vector.broadcast %10 : vector<1x128xf32> to vector<32x128xf32>
    %12 = arith.addf %9, %11 : vector<32x128xf32>
    %cst_11 = arith.constant 0.000000e+00 : f32
    %13 = vector.broadcast %cst_11 : f32 to vector<32x128xf32>
    %14 = arith.maximumf %12, %13 : vector<32x128xf32>
    %c0_12 = arith.constant 0 : index
    %c0_13 = arith.constant 0 : index
    %15 = vector.load %arg6[%c0_12, %c0_13] : memref<128x2xf32, #tpu.memory_space<vmem>>, vector<128x2xf32>
    %cst_14 = arith.constant dense<0.000000e+00> : vector<32x2xf32>
    %16 = tpu.matmul %14, %15, %cst_14 {dimension_numbers = #tpu.dot_dimension_numbers<[1], [0], [0], [1], [0, 0, 1, 1], [], []>} : vector<32x128xf32>, vector<128x2xf32>, vector<32x2xf32> -> vector<32x2xf32>
    %c0_15 = arith.constant 0 : index
    %c0_16 = arith.constant 0 : index
    %17 = vector.load %arg7[%c0_15, %c0_16] : memref<1x2xf32, #tpu.memory_space<vmem>>, vector<1x2xf32>
    %18 = vector.broadcast %17 : vector<1x2xf32> to vector<32x2xf32>
    %19 = arith.addf %16, %18 : vector<32x2xf32>
    %c0_17 = arith.constant 0 : index
    %c0_18 = arith.constant 0 : index
    %20 = vector.load %arg8[%c0_17, %c0_18] : memref<32x2xf32, #tpu.memory_space<vmem>>, vector<32x2xf32>
    tpu.vector_store %arg8[%c0_17, %c0_18], %19 {strides = array<i32>} : memref<32x2xf32, #tpu.memory_space<vmem>>, vector<32x2xf32>,
    return
  }
  func.func @transform_0(%arg0: i32) -> (i32, i32) {
    %c0_i32 = arith.constant 0 : i32
    %c0_i32_0 = arith.constant 0 : i32
    return %arg0, %c0_i32 : i32, i32
  }
  func.func @transform_1(%arg0: i32) -> (i32, i32) {
    %c0_i32 = arith.constant 0 : i32
    %c0_i32_0 = arith.constant 0 : i32
    %c0_i32_1 = arith.constant 0 : i32
    return %c0_i32, %c0_i32_0 : i32, i32
  }
  func.func @transform_2(%arg0: i32) -> (i32, i32) {
    %c0_i32 = arith.constant 0 : i32
    %c0_i32_0 = arith.constant 0 : i32
    %c0_i32_1 = arith.constant 0 : i32
    return %c0_i32, %c0_i32_0 : i32, i32
  }
  func.func @transform_3(%arg0: i32) -> (i32, i32) {
    %c0_i32 = arith.constant 0 : i32
    %c0_i32_0 = arith.constant 0 : i32
    %c0_i32_1 = arith.constant 0 : i32
    return %c0_i32, %c0_i32_0 : i32, i32
  }
  func.func @transform_4(%arg0: i32) -> (i32, i32) {
    %c0_i32 = arith.constant 0 : i32
    %c0_i32_0 = arith.constant 0 : i32
    %c0_i32_1 = arith.constant 0 : i32
    return %c0_i32, %c0_i32_0 : i32, i32
  }
  func.func @transform_5(%arg0: i32) -> (i32, i32) {
    %c0_i32 = arith.constant 0 : i32
    %c0_i32_0 = arith.constant 0 : i32
    %c0_i32_1 = arith.constant 0 : i32
    return %c0_i32, %c0_i32_0 : i32, i32
  }
  func.func @transform_6(%arg0: i32) -> (i32, i32) {
    %c0_i32 = arith.constant 0 : i32
    %c0_i32_0 = arith.constant 0 : i32
    %c0_i32_1 = arith.constant 0 : i32
    return %c0_i32, %c0_i32_0 : i32, i32
  }
  func.func @transform_7(%arg0: i32) -> (i32, i32) {
    %c0_i32 = arith.constant 0 : i32
    %c0_i32_0 = arith.constant 0 : i32
    return %arg0, %c0_i32 : i32, i32
  }
}

</mosaic_0001>

<bundles_post_ra>
// kernel: generator_forward.1
= control target key start
LH: loop header
LB: loop body
LE: loop exit
PB: predicated region body
PF: predicated region fallthrough
CT: control target
= control target key end

     0   :  { %s944_s24 = smov 0   ;;  %s1080_s0 = inlined_call_operand.vmem [shape: f32[64,8], index: 0, kind: input, shape index: {}]   ;;  %s1081_s1 = inlined_call_operand.vmem [shape: f32[8,128], index: 1, kind: input, shape index: {}]   ;;  %s1082_s2 = inlined_call_operand.vmem [shape: f32[1,128], index: 2, kind: input, shape index: {}]   ;;  %s1083_s3 = inlined_call_operand.vmem [shape: f32[128,128], index: 3, kind: input, shape index: {}]   ;;  %s1084_s4 = inlined_call_operand.vmem [shape: f32[1,128], index: 4, kind: input, shape index: {}]   ;;  %s1085_s5 = inlined_call_operand.vmem [shape: f32[128,2], index: 5, kind: input, shape index: {}]   ;;  %s1086_s6 = inlined_call_operand.vmem [shape: f32[1,2], index: 6, kind: input, shape index: {}]   ;;  %s1087_s7 = inlined_call_operand.vmem [shape: f32[64,2], index: 7, kind: output, shape index: {}]  }
   0x1 LB: > { %s677_s25 = sadd.s32 4294967295, %s902_s24   ;;  %p681_p0 = scmp.ge.s32.totalorder %s902_s24, 1  ;;  %s902_s24 = sphi %s944_s24, %s17_s24  }
   0x2   : > { %p238_p1 = scmp.lt.s32.totalorder %s902_s24, 3 }
   0x4   : > { %p239_p2 = pnand %p681_p0, %p238_p1 }
   0x5   : > { %v286_v0 = vld [vmem:[%s1081_s1] sm:$0xff] (!%p239_p2)  ;;  %s682_s28 = sshll.u32 (!%p239_p2), %s677_s25, 2  ;;  %v397_v2 = vld [vmem:[%s1083_s3 + $0x8] sm:$0xff] (!%p239_p2)  ;;  %v398_v4 = vld [vmem:[%s1083_s3 + $0x10] sm:$0xff] (!%p239_p2)  ;;  %vm294_vm0 = vcmask (!%p239_p2), 64512   ;;  %vm616_vm1 = vcmask (!%p239_p2), 15360  }
   0x6   : > { %242 = sbr.rel (%p239_p2) target bundleno = 674 (0x2a2), region = 48  ;;  %v396_v1 = vld [vmem:[%s1083_s3] sm:$0xff] (!%p239_p2)  ;;  %740 = vmatprep.subr.mxu0 (!%p239_p2), %v286_v0  ;;  %p271_p3 = scmp.lt.s32.totalorder (!%p239_p2), %s682_s28, 7  ;;  %v399_v5 = vld [vmem:[%s1083_s3 + $0x18] sm:$0xff] (!%p239_p2)  ;;  %v401_v8 = vld [vmem:[%s1083_s3 + $0x28] sm:$0xff] (!%p239_p2) }
   0x7   : > { %v824_v3 = vpack.c.bf16 (!%p239_p2), %v397_v2, %v396_v1  ;;  %741 = vmatpush3.msra.mxu0 (!%p239_p2), %v286_v0  ;;  %v828_v6 = vpack.c.bf16 (!%p239_p2), %v399_v5, %v398_v4  ;;  %v400_v7 = vld [vmem:[%s1083_s3 + $0x20] sm:$0xff] (!%p239_p2)  ;;  %v402_v10 = vld [vmem:[%s1083_s3 + $0x30] sm:$0xff] (!%p239_p2)  ;;  %v403_v11 = vld [vmem:[%s1083_s3 + $0x38] sm:$0xff] (!%p239_p2) }
   0x8   : > { %v832_v9 = vpack.c.bf16 (!%p239_p2), %v401_v8, %v400_v7  ;;  %v836_v15 = vpack.c.bf16 (!%p239_p2), %v403_v11, %v402_v10  ;;  %v404_v17 = vld [vmem:[%s1083_s3 + $0x40] sm:$0xff] (!%p239_p2)  ;;  %v405_v18 = vld [vmem:[%s1083_s3 + $0x48] sm:$0xff] (!%p239_p2)  ;;  %v406_v20 = vld [vmem:[%s1083_s3 + $0x50] sm:$0xff] (!%p239_p2) }
   0x9   : > { %825 = vmatprep.subr.bf16.mxu1 (!%p239_p2), %v824_v3  ;;  %v840_v19 = vpack.c.bf16 (!%p239_p2), %v405_v18, %v404_v17  ;;  %v407_v21 = vld [vmem:[%s1083_s3 + $0x58] sm:$0xff] (!%p239_p2)  ;;  %v408_v23 = vld [vmem:[%s1083_s3 + $0x60] sm:$0xff] (!%p239_p2)  ;;  %v409_v24 = vld [vmem:[%s1083_s3 + $0x68] sm:$0xff] (!%p239_p2) }
   0xa   : > { %827 = vmatpush3.bf16.msra.mxu1 (!%p239_p2), %v824_v3  ;;  %v844_v22 = vpack.c.bf16 (!%p239_p2), %v407_v21, %v406_v20  ;;  %v848_v25 = vpack.c.bf16 (!%p239_p2), %v409_v24, %v408_v23  ;;  %v410_v26 = vld [vmem:[%s1083_s3 + $0x70] sm:$0xff] (!%p239_p2)  ;;  %v411_v27 = vld [vmem:[%s1083_s3 + $0x78] sm:$0xff] (!%p239_p2)  ;;  %v508_v29 = vld [vmem:[%s1085_s5] sm:$0xff] (!%p239_p2) }
   0xb   : > { %829 = vmatprep.subr.bf16.mxu1 (!%p239_p2), %v828_v6  ;;  %v852_v28 = vpack.c.bf16 (!%p239_p2), %v411_v27, %v410_v26  ;;  %v509_v30 = vld [vmem:[%s1085_s5 + $0x8] sm:$0xff] (!%p239_p2)  ;;  %v510_v31 = vld [vmem:[%s1085_s5 + $0x10] sm:$0xff] (!%p239_p2)  ;;  %v511_v33 = vld [vmem:[%s1085_s5 + $0x18] sm:$0xff] (!%p239_p2) }
   0xc   : > { %v856_v32 = vpack.c.bf16 (!%p239_p2), %v509_v30, %v508_v29  ;;  %v860_v34 = vpack.c.bf16 (!%p239_p2), %v511_v33, %v510_v31  ;;  %v512_v35 = vld [vmem:[%s1085_s5 + $0x20] sm:$0xff] (!%p239_p2)  ;;  %v513_v36 = vld [vmem:[%s1085_s5 + $0x28] sm:$0xff] (!%p239_p2)  ;;  %v514_v38 = vld [vmem:[%s1085_s5 + $0x30] sm:$0xff] (!%p239_p2) }
   0xd   : > { %s1089_s28 = smov (!%p271_p3, %s682_s28), 7  ;;  %v864_v37 = vpack.c.bf16 %v513_v36, %v512_v35  ;;  %v515_v39 = vld [vmem:[%s1085_s5 + $0x38] sm:$0xff]  ;;  %v516_v41 = vld [vmem:[%s1085_s5 + $0x40] sm:$0xff]  ;;  %v517_v42 = vld [vmem:[%s1085_s5 + $0x48] sm:$0xff] }
   0xe   : > { %s683_s18 = sshll.u32 %s1089_s28, 3  ;;  %831 = vmatpush3.bf16.msra.mxu1 %v828_v6  ;;  %857 = vmatprep.subr.bf16.mxu0 %v856_v32  ;;  %v868_v40 = vpack.c.bf16 %v515_v39, %v514_v38  ;;  %v872_v43 = vpack.c.bf16 %v517_v42, %v516_v41  ;;  %v518_v44 = vld [vmem:[%s1085_s5 + $0x50] sm:$0xff]  ;;  %v519_v45 = vld [vmem:[%s1085_s5 + $0x58] sm:$0xff]  ;;  %v520_v47 = vld [vmem:[%s1085_s5 + $0x60] sm:$0xff] }
   0xf   : > { %s274_s21 = scalar_lea.vmem %s1080_s0, %s683_s18  ;;  %833 = vmatprep.subr.bf16.mxu1 %v832_v9  ;;  %v876_v46 = vpack.c.bf16 %v519_v45, %v518_v44  ;;  %v521_v48 = vld [vmem:[%s1085_s5 + $0x68] sm:$0xff]  ;;  %v686_v50 = vld [vmem:[%s1082_s2] ss:$0 sm:$0xff]  ;;  %v522_v63 = vld [vmem:[%s1085_s5 + $0x70] sm:$0xff]  ;;  %s280_s22 = scalar_lea.vmem %s1087_s7, %s683_s18 }
  0x10   : > { %v282_v12 = vld [vmem:[%s274_s21] sm:$0xff]  ;;  %v283_v13 = vld [vmem:[%s274_s21 + $0x8] sm:$0xff]  ;;  %v284_v14 = vld [vmem:[%s274_s21 + $0x10] sm:$0xff]  ;;  %v880_v49 = vpack.c.bf16 %v521_v48, %v520_v47 }
  0x11   : > { %742 = vmatprep.mubr.msk.f32.mxu0 %vm294_vm0, %v282_v12  ;;  %v285_v16 = vld [vmem:[%s274_s21 + $0x18] sm:$0xff]  ;;  %v691_v2 = vld [vmem:[%s1084_s4] ss:$0 sm:$0xff] }
  0x12   : > { %743 = vmatmul.mubr.msk.f32.vlgmr.msra.gmra.mrb[0].mxu0 %vm294_vm0, %v283_v13  ;;  %835 = vmatpush3.bf16.msra.mxu1 %v832_v9  ;;  %v523_v0 = vld [vmem:[%s1085_s5 + $0x78] sm:$0xff] }
  0x13   : > { %745 = vmatprep.mubr.msk.f32.mxu0 %vm294_vm0, %v284_v14  ;;  %837 = vmatprep.subr.bf16.mxu1 %v836_v15  ;;  %v884_v1 = vpack.c.bf16 %v523_v0, %v522_v63 }
  0x14   : > { %859 = vmatpush3.bf16.msra.mxu0 %v856_v32 }
  0x15   : > { %861 = vmatprep.subr.bf16.mxu0 %v860_v34 }
  0x16   : > { %746 = vmatmul.mubr.msk.f32.gmra.mrb[2].mxu0 %vm294_vm0, %v285_v16  ;;  %839 = vmatpush3.bf16.msra.mxu1 %v836_v15  ;;  %v692_v15 = vld [vmem:[%s1086_s6] ss:$0 sm:$0xff] }
  0x17   : > { %841 = vmatprep.subr.bf16.mxu1 %v840_v19 }
  0x18   : > { %863 = vmatpush3.bf16.msra.mxu0 %v860_v34 }
  0x19   : > { %865 = vmatprep.subr.bf16.mxu0 %v864_v37 }
  0x1a   : > { %843 = vmatpush3.bf16.msra.mxu1 %v840_v19 }
  0x1b   : > { %845 = vmatprep.subr.bf16.mxu1 %v844_v22 }
  0x1c   : > { %867 = vmatpush3.bf16.msra.mxu0 %v864_v37 }
  0x1d   : > { %869 = vmatprep.subr.bf16.mxu0 %v868_v40 }
  0x1e   : > { %847 = vmatpush3.bf16.msra.mxu1 %v844_v22 }
  0x1f   : > { %849 = vmatprep.subr.bf16.mxu1 %v848_v25 }
  0x20   : > { %871 = vmatpush3.bf16.msra.mxu0 %v868_v40 }
  0x21   : > { %873 = vmatprep.subr.bf16.mxu0 %v872_v43 }
  0x22   : > { %851 = vmatpush3.bf16.msra.mxu1 %v848_v25 }
  0x23   : > { %853 = vmatprep.subr.bf16.mxu1 %v852_v28 }
  0x24   : > { %875 = vmatpush3.bf16.msra.mxu0 %v872_v43 }
  0x25   : > { %877 = vmatprep.subr.bf16.mxu0 %v876_v46 }
  0x26   : > { %855 = vmatpush3.bf16.msra.mxu1 %v852_v28 }
  0x28   : > { %879 = vmatpush3.bf16.msra.mxu0 %v876_v46 }
  0x29   : > { %881 = vmatprep.subr.bf16.mxu0 %v880_v49 }
  0x2c   : > { %883 = vmatpush3.bf16.msra.mxu0 %v880_v49 }
  0x2d   : > { %885 = vmatprep.subr.bf16.mxu0 %v884_v1 }
  0x30   : > { %887 = vmatpush3.bf16.msra.mxu0 %v884_v1 }
  0xe5   : > { %v744_v51 = vpop.f32.mrb[0].mxu0 }
  0xe6   : > { %v379_v52 = vadd.f32 %v744_v51, %v686_v50  ;;  %v373_v53 = vpop.f32.mrb[1].mxu0 }
  0xe7   : > { %v374_v54 = vadd.f32 %v686_v50, %v373_v53 }
  0xe8   : > { %v393_v57 = vmax.f32 %v379_v52, 0.0 }
  0xe9   : > { %v747_v55 = vpop.f32.mrb[2].mxu0  ;;  %v392_v56 = vmax.f32 %v374_v54, 0.0 }
  0xea   : > { %v389_v58 = vadd.f32 %v747_v55, %v686_v50  ;;  %v383_v59 = vpop.f32.mrb[3].mxu0 }
  0xeb   : > { %v384_v60 = vadd.f32 %v686_v50, %v383_v59  ;;  %780 = vmatprep.mubr.f32.mxu1 %v392_v56 }
  0xec   : > { %781 = vmatmul.mubr.f32.vlgmr.msra.gmra.mrb[0].mxu1 %v393_v57  ;;  %v395_v62 = vmax.f32 %v389_v58, 0.0 }
  0xed   : > { %v394_v61 = vmax.f32 %v384_v60, 0.0 }
  0xef   : > { %783 = vmatprep.mubr.f32.mxu1 %v394_v61 }
  0xf0   : > { %784 = vmatmul.mubr.f32.gmra.mrb[2].mxu1 %v395_v62 }
 0x1bf   : > { %v782_v3 = vpop.f32.mrb[0].mxu1 }
 0x1c0   : > { %v491_v4 = vadd.f32 %v782_v3, %v691_v2  ;;  %v485_v5 = vpop.f32.mrb[1].mxu1 }
 0x1c1   : > { %v486_v6 = vadd.f32 %v691_v2, %v485_v5 }
 0x1c2   : > { %v505_v9 = vmax.f32 %v491_v4, 0.0 }
 0x1c3   : > { %v504_v7 = vmax.f32 %v486_v6, 0.0  ;;  %v785_v8 = vpop.f32.mrb[2].mxu1 }
 0x1c4   : > { %v501_v10 = vadd.f32 %v785_v8, %v691_v2  ;;  %v495_v11 = vpop.f32.mrb[3].mxu1 }
 0x1c5   : > { %v496_v12 = vadd.f32 %v691_v2, %v495_v11  ;;  %818 = vmatprep.mubr.f32.mxu0 %v504_v7 }
 0x1c6   : > { %819 = vmatmul.mubr.f32.vlgmr.msra.gmra.mrb[4].mxu0 %v505_v9  ;;  %v507_v14 = vmax.f32 %v501_v10, 0.0 }
 0x1c7   : > { %v506_v13 = vmax.f32 %v496_v12, 0.0 }
 0x1c9   : > { %821 = vmatprep.mubr.f32.mxu0 %v506_v13 }
 0x1ca   : > { %822 = vmatmul.mubr.f32.gmra.mrb[6].mxu0 %v507_v14 }
 0x299   : > { %v820_v16 = vpop.f32.mrb[4].mxu0 }
 0x29a   : > { %v597_v17 = vpop.f32.mrb[5].mxu0  ;;  %v603_v19 = vadd.f32 %v820_v16, %v692_v15 }
 0x29b   : > { %v598_v18 = vadd.f32 %v692_v15, %v597_v17 }
 0x29c   : > { %618 = vst.msk [vmem:[%s280_s22 + $0x8] sm:$0xff] %vm616_vm1, %v603_v19 }
 0x29d   : > { %617 = vst.msk [vmem:[%s280_s22] sm:$0xff] %vm616_vm1, %v598_v18  ;;  %v823_v20 = vpop.f32.mrb[6].mxu0 }
 0x29e   : > { %v607_v21 = vpop.f32.mrb[7].mxu0  ;;  %v613_v23 = vadd.f32 %v823_v20, %v692_v15 }
 0x29f   : > { %v608_v22 = vadd.f32 %v692_v15, %v607_v21 }
 0x2a0   : > { %620 = vst.msk [vmem:[%s280_s22 + $0x18] sm:$0xff] %vm616_vm1, %v613_v23 }
 0x2a1   : > { %619 = vst.msk [vmem:[%s280_s22 + $0x10] sm:$0xff] %vm616_vm1, %v608_v22 }
 0x2a2 PF: > { %s17_s24 = sadd.s32 1, %s902_s24  }
 0x2a3   : > { %p14_p4 = scmp.ge.s32.totalorder %s17_s24, 4  }
 0x2a5   :  { %16 = sbr.rel (!%p14_p4) target bundleno = 1 (0x1), region = 78 }

</bundles_post_ra>
